<compile_context>
chip_gen: v7x
topology: tpu7x:2x2x1
jax: 0.10.0
libtpu: 0.0.40
codegen_flags: <defaults>
</compile_context>

<pallas_src>
import functools

import jax
import jax.numpy as jnp
from jax.experimental import pallas as pl
from jax.experimental.pallas import tpu as pltpu

BN_EPS = 1e-5
_VMEM_LIMIT = 32 * 1024 * 1024  # safe on v5e/v6e (128 MiB phys) and v7x (64 MiB phys)


def _stats_kernel(x_ref, gram_ref, sum_ref):
    # x_ref:    (1, Cin, TM)  lane-dense tile of the strided, channels-on-sublane slab
    # gram_ref: (Cin, Cin)    accumulator output (resident across the whole grid)
    # sum_ref:  (Cin, 1)      accumulator output (per-channel sum over lanes)
    @pl.when((pl.program_id(0) == 0) & (pl.program_id(1) == 0))
    def _init():
        gram_ref[...] = jnp.zeros_like(gram_ref)
        sum_ref[...] = jnp.zeros_like(sum_ref)

    x = x_ref[0].astype(jnp.float32)                       # (Cin, TM)
    # Gram = X X^T : contraction over the lane axis (MXU-friendly, Q.K^T style).
    gram_ref[...] += jnp.einsum(
        "ct,dt->cd", x, x, preferred_element_type=jnp.float32)
    sum_ref[...] += jnp.sum(x, axis=1, keepdims=True)      # (Cin, 1)


def _normalize_kernel(x_ref, w_ref, b_ref, o_ref):
    # x_ref: (1, Cin, TM); w_ref: (Cout, Cin) folded weight; b_ref: (Cout, 1) folded bias
    # o_ref: (1, Cout, TM)  lane-dense output tile
    x = x_ref[0].astype(jnp.float32)                       # (Cin, TM)
    # For tiny Cin/Cout this barely uses the MXU (a VPU broadcast-FMA would also work), but
    # the kernel is HBM-bound so the matmul is fully hidden; for real ResNet channel counts
    # this is the right unit.
    y = jnp.dot(w_ref[...], x, preferred_element_type=jnp.float32)   # (Cout, TM)
    o_ref[0] = (y + b_ref[...]).astype(o_ref.dtype)


@functools.partial(jax.jit, static_argnames=("stride", "tm"))
def downsampling_forward(x, conv_w, bn_gamma, bn_beta, *, stride, tm=1024):
    """x: (N, Cin, H, W) NCHW; conv_w: (Cout, Cin, 1, 1); returns (N, Cout, Ho, Wo)."""
    N, Cin, H, W = x.shape
    Cout = conv_w.shape[0]

    # kernel_size=1 with stride s: output pixel (ho, wo) reads input (ho*s, wo*s).
    xs = x[:, :, ::stride, ::stride]                        # (N, Cin, Ho, Wo)
    Ho, Wo = xs.shape[2], xs.shape[3]
    HW = Ho * Wo
    M = N * HW                                              # true element count for BN stats

    # Channels on sublanes, flattened spatial on lanes — no transpose needed (NCHW native).
    x3 = xs.reshape(N, Cin, HW)

    # Lane-axis tile: multiple of 128, zero-pad HW up to a multiple of TM.
    # Zero columns contribute nothing to the Gram / sums, and we divide by the true M.
    hw128 = ((HW + 127) // 128) * 128
    TM = max(128, (min(tm, hw128) // 128) * 128)
    HWp = ((HW + TM - 1) // TM) * TM
    if HWp != HW:
        x3 = jnp.pad(x3, ((0, 0), (0, 0), (0, HWp - HW)))
    nt = HWp // TM
    fdt = jnp.dtype(x.dtype).itemsize

    # ---- Pass 1: per-channel sums + Cin x Cin Gram (tiled reduction over N and lanes) ----
    gram, sums = pl.pallas_call(
        _stats_kernel,
        out_shape=(jax.ShapeDtypeStruct((Cin, Cin), jnp.float32),
                   jax.ShapeDtypeStruct((Cin, 1), jnp.float32)),
        grid_spec=pltpu.PrefetchScalarGridSpec(
            num_scalar_prefetch=0,
            grid=(N, nt),
            in_specs=[pl.BlockSpec((1, Cin, TM), lambda n, t: (n, 0, t))],
            out_specs=(pl.BlockSpec((Cin, Cin), lambda n, t: (0, 0)),
                       pl.BlockSpec((Cin, 1), lambda n, t: (0, 0))),
        ),
        compiler_params=pltpu.CompilerParams(
            dimension_semantics=("arbitrary", "arbitrary"),
            vmem_limit_bytes=_VMEM_LIMIT),
        cost_estimate=pl.CostEstimate(
            flops=2 * N * HWp * Cin * Cin,
            transcendentals=0,
            bytes_accessed=N * HWp * Cin * fdt),
    )(x3)

    # ---- Fold BatchNorm (training-mode batch stats) into the 1x1-conv weights (tiny math) ----
    w2d = conv_w.reshape(Cout, Cin).astype(jnp.float32)     # (Cout, Cin)
    mean_x = sums[:, 0] / M                                 # (Cin,)
    mean_y = w2d @ mean_x                                   # (Cout,)
    ey2 = jnp.einsum("oc,cd,od->o", w2d, gram, w2d) / M     # diag(W G W^T) / M
    var_y = ey2 - mean_y * mean_y                           # biased variance (PyTorch train)
    scale = bn_gamma.astype(jnp.float32) * jax.lax.rsqrt(var_y + BN_EPS)   # (Cout,)
    w_fold = w2d * scale[:, None]                           # (Cout, Cin)
    b_fold = (bn_beta.astype(jnp.float32) - scale * mean_y)[:, None]       # (Cout, 1)

    # ---- Pass 2: single matmul + bias per tile, lane-dense output (normalization is free) ----
    out3 = pl.pallas_call(
        _normalize_kernel,
        out_shape=jax.ShapeDtypeStruct((N, Cout, HWp), x.dtype),
        grid_spec=pltpu.PrefetchScalarGridSpec(
            num_scalar_prefetch=0,
            grid=(N, nt),
            in_specs=[pl.BlockSpec((1, Cin, TM), lambda n, t: (n, 0, t)),
                      pl.BlockSpec((Cout, Cin), lambda n, t: (0, 0)),
                      pl.BlockSpec((Cout, 1), lambda n, t: (0, 0))],
            out_specs=pl.BlockSpec((1, Cout, TM), lambda n, t: (n, 0, t)),
        ),
        compiler_params=pltpu.CompilerParams(
            dimension_semantics=("parallel", "parallel"),
            vmem_limit_bytes=_VMEM_LIMIT),
        cost_estimate=pl.CostEstimate(
            flops=2 * N * HWp * Cin * Cout,
            transcendentals=0,
            bytes_accessed=N * HWp * (Cin + Cout) * fdt),
    )(x3, w_fold, b_fold)

    # Drop lane padding and reshape straight back to NCHW (no transpose needed).
    return out3[:, :, :HW].reshape(N, Cout, Ho, Wo)


def _reference_forward(x, conv_w, bn_gamma, bn_beta, stride):
    """Pure-JAX reference mirroring PyTorch conv1x1(stride) + BatchNorm2d(train)."""
    xs = x[:, :, ::stride, ::stride]
    y = jnp.einsum("ncij,oc->noij", xs, conv_w.reshape(conv_w.shape[0], -1))
    mean = jnp.mean(y, axis=(0, 2, 3), keepdims=True)
    var = jnp.mean((y - mean) ** 2, axis=(0, 2, 3), keepdims=True)
    g = bn_gamma.reshape(1, -1, 1, 1)
    b = bn_beta.reshape(1, -1, 1, 1)
    return (y - mean) * jax.lax.rsqrt(var + BN_EPS) * g + b


if __name__ == "__main__":
    # Module config: DownSampling(inplanes=4, planes=8, stride=2)
    inplanes, planes, stride = 4, 8, 2
    N, H, W = 2, 32, 32   # -> Ho = Wo = 16, HW = 256, exercises a (2, 2) grid with tm=128

    key = jax.random.PRNGKey(0)
    kx, kw, kg, kb = jax.random.split(key, 4)

    x = jax.random.normal(kx, (N, inplanes, H, W), dtype=jnp.float32)
    conv_w = 0.1 * jax.random.normal(kw, (planes, inplanes, 1, 1), dtype=jnp.float32)
    bn_gamma = 1.0 + 0.1 * jax.random.normal(kg, (planes,), dtype=jnp.float32)
    bn_beta = 0.1 * jax.random.normal(kb, (planes,), dtype=jnp.float32)

    out = downsampling_forward(x, conv_w, bn_gamma, bn_beta, stride=stride, tm=128)
    out = jax.block_until_ready(out)

    ref = _reference_forward(x, conv_w, bn_gamma, bn_beta, stride)
    assert out.shape == (N, planes, H // stride, W // stride), out.shape
    assert jnp.allclose(out, ref, atol=1e-5, rtol=1e-5), "mismatch vs reference"

    print("KERNEL_OK")
</pallas_src>

<mosaic_0001>
module attributes {stable_mosaic.version = 11 : i64} {
  func.func @_stats_kernel(%arg0: i32, %arg1: i32, %arg2: memref<1x4x128xf32, #tpu.memory_space<vmem>>, %arg3: memref<4x4xf32, #tpu.memory_space<vmem>>, %arg4: memref<4x1xf32, #tpu.memory_space<vmem>>) attributes {dimension_semantics = [#tpu.dimension_semantics<arbitrary>, #tpu.dimension_semantics<arbitrary>], iteration_bounds = array<i64: 2, 2>, scalar_prefetch = 0 : i64, scratch_operands = 0 : i64, tpu.core_type = #tpu.core_type<tc>, window_params = [{transform_indices = @transform_0, window_bounds = array<i64: 1, 4, 128>}, {pipeline_mode = #tpu.pipeline_mode<synchronous>, transform_indices = @transform_1, window_bounds = array<i64: 4, 4>}, {pipeline_mode = #tpu.pipeline_mode<synchronous>, transform_indices = @transform_2, window_bounds = array<i64: 4, 1>}]} {
    %c0_i32 = arith.constant 0 : i32
    %0 = arith.cmpi eq, %arg0, %c0_i32 : i32
    %c0_i32_0 = arith.constant 0 : i32
    %1 = arith.cmpi eq, %arg1, %c0_i32_0 : i32
    %2 = arith.andi %0, %1 : i1
    %3 = arith.extui %2 : i1 to i32
    %c0_i32_1 = arith.constant 0 : i32
    %4 = arith.cmpi ne, %3, %c0_i32_1 : i32
    scf.if %4 {
      %cst_13 = arith.constant 0.000000e+00 : f32
      %16 = vector.broadcast %cst_13 : f32 to vector<4x4xf32>
      %c0_14 = arith.constant 0 : index
      %c0_15 = arith.constant 0 : index
      %17 = vector.load %arg3[%c0_14, %c0_15] : memref<4x4xf32, #tpu.memory_space<vmem>>, vector<4x4xf32>
      tpu.vector_store %arg3[%c0_14, %c0_15], %16 {strides = array<i32>} : memref<4x4xf32, #tpu.memory_space<vmem>>, vector<4x4xf32>,
      %cst_16 = arith.constant 0.000000e+00 : f32
      %18 = vector.broadcast %cst_16 : f32 to vector<4x1xf32>
      %c0_17 = arith.constant 0 : index
      %c0_18 = arith.constant 0 : index
      %19 = vector.load %arg4[%c0_17, %c0_18] : memref<4x1xf32, #tpu.memory_space<vmem>>, vector<4x1xf32>
      tpu.vector_store %arg4[%c0_17, %c0_18], %18 {strides = array<i32>} : memref<4x1xf32, #tpu.memory_space<vmem>>, vector<4x1xf32>,
    } else {
    }
    %c0 = arith.constant 0 : index
    %c0_2 = arith.constant 0 : index
    %c0_3 = arith.constant 0 : index
    %5 = vector.load %arg2[%c0, %c0_2, %c0_3] : memref<1x4x128xf32, #tpu.memory_space<vmem>>, vector<1x4x128xf32>
    %6 = vector.shape_cast %5 : vector<1x4x128xf32> to vector<4x128xf32>
    %c0_4 = arith.constant 0 : index
    %c0_5 = arith.constant 0 : index
    %7 = vector.load %arg3[%c0_4, %c0_5] : memref<4x4xf32, #tpu.memory_space<vmem>>, vector<4x4xf32>
    "tpu.trace_start"() <{level = 10 : i32, message = "ct,dt->cd"}> : () -> ()
    %cst = arith.constant dense<0.000000e+00> : vector<4x4xf32>
    %8 = tpu.matmul %6, %6, %cst {dimension_numbers = #tpu.dot_dimension_numbers<[1], [1], [0], [0], [0, 0, 1, 0], [], []>} : vector<4x128xf32>, vector<4x128xf32>, vector<4x4xf32> -> vector<4x4xf32>
    "tpu.trace_stop"() : () -> ()
    %9 = arith.addf %7, %8 : vector<4x4xf32>
    %c0_6 = arith.constant 0 : index
    %c0_7 = arith.constant 0 : index
    %10 = vector.load %arg3[%c0_6, %c0_7] : memref<4x4xf32, #tpu.memory_space<vmem>>, vector<4x4xf32>
    tpu.vector_store %arg3[%c0_6, %c0_7], %9 {strides = array<i32>} : memref<4x4xf32, #tpu.memory_space<vmem>>, vector<4x4xf32>,
    %c0_8 = arith.constant 0 : index
    %c0_9 = arith.constant 0 : index
    %11 = vector.load %arg4[%c0_8, %c0_9] : memref<4x1xf32, #tpu.memory_space<vmem>>, vector<4x1xf32>
    %cst_10 = arith.constant dense<0.000000e+00> : vector<4xf32>
    %12 = vector.multi_reduction <add>, %6, %cst_10 [1] : vector<4x128xf32> to vector<4xf32>
    %13 = vector.shape_cast %12 : vector<4xf32> to vector<4x1xf32>
    %14 = arith.addf %11, %13 : vector<4x1xf32>
    %c0_11 = arith.constant 0 : index
    %c0_12 = arith.constant 0 : index
    %15 = vector.load %arg4[%c0_11, %c0_12] : memref<4x1xf32, #tpu.memory_space<vmem>>, vector<4x1xf32>
    tpu.vector_store %arg4[%c0_11, %c0_12], %14 {strides = array<i32>} : memref<4x1xf32, #tpu.memory_space<vmem>>, vector<4x1xf32>,
    return
  }
  func.func @transform_0(%arg0: i32, %arg1: i32) -> (i32, i32, i32) {
    %c0_i32 = arith.constant 0 : i32
    %c0_i32_0 = arith.constant 0 : i32
    return %arg0, %c0_i32, %arg1 : i32, i32, i32
  }
  func.func @transform_1(%arg0: i32, %arg1: i32) -> (i32, i32) {
    %c0_i32 = arith.constant 0 : i32
    %c0_i32_0 = arith.constant 0 : i32
    %c0_i32_1 = arith.constant 0 : i32
    return %c0_i32, %c0_i32_0 : i32, i32
  }
  func.func @transform_2(%arg0: i32, %arg1: i32) -> (i32, i32) {
    %c0_i32 = arith.constant 0 : i32
    %c0_i32_0 = arith.constant 0 : i32
    %c0_i32_1 = arith.constant 0 : i32
    return %c0_i32, %c0_i32_0 : i32, i32
  }
}

module attributes {stable_mosaic.version = 11 : i64} {
  func.func @_normalize_kernel(%arg0: i32, %arg1: i32, %arg2: memref<1x4x128xf32, #tpu.memory_space<vmem>>, %arg3: memref<8x4xf32, #tpu.memory_space<vmem>>, %arg4: memref<8x1xf32, #tpu.memory_space<vmem>>, %arg5: memref<1x8x128xf32, #tpu.memory_space<vmem>>) attributes {dimension_semantics = [#tpu.dimension_semantics<parallel>, #tpu.dimension_semantics<parallel>], iteration_bounds = array<i64: 2, 2>, scalar_prefetch = 0 : i64, scratch_operands = 0 : i64, tpu.core_type = #tpu.core_type<tc>, window_params = [{transform_indices = @transform_0, window_bounds = array<i64: 1, 4, 128>}, {pipeline_mode = #tpu.pipeline_mode<synchronous>, transform_indices = @transform_1, window_bounds = array<i64: 8, 4>}, {pipeline_mode = #tpu.pipeline_mode<synchronous>, transform_indices = @transform_2, window_bounds = array<i64: 8, 1>}, {transform_indices = @transform_3, window_bounds = array<i64: 1, 8, 128>}]} {
    %c0 = arith.constant 0 : index
    %c0_0 = arith.constant 0 : index
    %c0_1 = arith.constant 0 : index
    %0 = vector.load %arg2[%c0, %c0_0, %c0_1] : memref<1x4x128xf32, #tpu.memory_space<vmem>>, vector<1x4x128xf32>
    %1 = vector.shape_cast %0 : vector<1x4x128xf32> to vector<4x128xf32>
    %c0_2 = arith.constant 0 : index
    %c0_3 = arith.constant 0 : index
    %2 = vector.load %arg3[%c0_2, %c0_3] : memref<8x4xf32, #tpu.memory_space<vmem>>, vector<8x4xf32>
    %cst = arith.constant dense<0.000000e+00> : vector<8x128xf32>
    %3 = tpu.matmul %2, %1, %cst {dimension_numbers = #tpu.dot_dimension_numbers<[1], [0], [0], [1], [0, 0, 1, 1], [], []>} : vector<8x4xf32>, vector<4x128xf32>, vector<8x128xf32> -> vector<8x128xf32>
    %c0_4 = arith.constant 0 : index
    %c0_5 = arith.constant 0 : index
    %4 = vector.load %arg4[%c0_4, %c0_5] : memref<8x1xf32, #tpu.memory_space<vmem>>, vector<8x1xf32>
    %5 = vector.broadcast %4 : vector<8x1xf32> to vector<8x128xf32>
    %6 = arith.addf %3, %5 : vector<8x128xf32>
    %c0_6 = arith.constant 0 : index
    %c0_7 = arith.constant 0 : index
    %c0_8 = arith.constant 0 : index
    %7 = vector.load %arg5[%c0_6, %c0_7, %c0_8] : memref<1x8x128xf32, #tpu.memory_space<vmem>>, vector<1x8x128xf32>
    %8 = vector.shape_cast %7 : vector<1x8x128xf32> to vector<8x128xf32>
    %9 = vector.shape_cast %6 : vector<8x128xf32> to vector<1x8x128xf32>
    tpu.vector_store %arg5[%c0_6, %c0_7, %c0_8], %9 {strides = array<i32>} : memref<1x8x128xf32, #tpu.memory_space<vmem>>, vector<1x8x128xf32>,
    return
  }
  func.func @transform_0(%arg0: i32, %arg1: i32) -> (i32, i32, i32) {
    %c0_i32 = arith.constant 0 : i32
    %c0_i32_0 = arith.constant 0 : i32
    return %arg0, %c0_i32, %arg1 : i32, i32, i32
  }
  func.func @transform_1(%arg0: i32, %arg1: i32) -> (i32, i32) {
    %c0_i32 = arith.constant 0 : i32
    %c0_i32_0 = arith.constant 0 : i32
    %c0_i32_1 = arith.constant 0 : i32
    return %c0_i32, %c0_i32_0 : i32, i32
  }
  func.func @transform_2(%arg0: i32, %arg1: i32) -> (i32, i32) {
    %c0_i32 = arith.constant 0 : i32
    %c0_i32_0 = arith.constant 0 : i32
    %c0_i32_1 = arith.constant 0 : i32
    return %c0_i32, %c0_i32_0 : i32, i32
  }
  func.func @transform_3(%arg0: i32, %arg1: i32) -> (i32, i32, i32) {
    %c0_i32 = arith.constant 0 : i32
    %c0_i32_0 = arith.constant 0 : i32
    return %arg0, %c0_i32, %arg1 : i32, i32, i32
  }
}

</mosaic_0001>

<bundles_post_ra>
// kernel: downsampling_forward.2
= control target key start
LH: loop header
LB: loop body
LE: loop exit
PB: predicated region body
PF: predicated region fallthrough
CT: control target
= control target key end

     0   :  { %s410_s9 = smov 0   ;;  %s412_s10 = smov 0   ;;  %s476_s0 = inlined_call_operand.vmem [shape: f32[2,4,256], index: 0, kind: input, shape index: {}]   ;;  %s477_s1 = inlined_call_operand.vmem [shape: f32[4,4], index: 1, kind: output, shape index: {0}]   ;;  %s478_s2 = inlined_call_operand.vmem [shape: f32[4,1], index: 2, kind: output, shape index: {1}]  }
   0x1   :  { %s414_s11 = smov 0   ;;  %s416_s12 = smov 0  }
   0x2   :  { %s418_s13 = smov 0  }
   0x3 LB: > { %s22_s14 = sadd.s32 1, %s382_s11  ;;  %s25_s15 = sadd.s32 1, %s386_s12  ;;  %s390_s13 = sphi %s418_s13, %s13_s13   ;;  %s386_s12 = sphi %s416_s12, %s482_s12   ;;  %s382_s11 = sphi %s414_s11, %s481_s11   ;;  %s378_s10 = sphi %s412_s10, %s480_s10   ;;  %s374_s9 = sphi %s410_s9, %s479_s9  }
   0x4   : > { %p23_p0 = scmp.ge.s32.totalorder %s22_s14, 2  ;;  %p297_p1 = scmp.ge.s32.totalorder %s390_s13, 1 }
   0x5   : > { %p122_p2 = scmp.lt.s32.totalorder %s390_s13, 5 }
   0x6   : > { %s484_s14 = smov (%p23_p0, %s22_s14), 0  ;;  %s486_s15 = smov (!%p23_p0, %s25_s15), %s386_s12 }
   0x7   : > { %p123_p3 = pnand %p297_p1, %p122_p2  ;;  %p27_p4 = scmp.ge.s32.totalorder %s486_s15, 2 }
   0x8   : > { %p142_p5 = scmp.lt.s32.totalorder (!%p123_p3), %s378_s10, 1  ;;  %p144_p6 = scmp.lt.s32.totalorder (!%p123_p3), %s374_s9, 1 }
   0x9   : > { %s488_s15 = smov (%p27_p4, %s486_s15), 0  ;;  %126 = sbr.rel (%p123_p3) target bundleno = 244 (0xf4), region = 24 }
   0xa   : > { %p150_p7 = scmp.eq.s32.totalorder (!%p123_p3), %s378_s10, 0  ;;  %p151_p8 = scmp.eq.s32.totalorder (!%p123_p3), %s374_s9, 0 }
   0xc   : > { %p152_p9 = pnand (!%p123_p3), %p151_p8, %p150_p7 }
  0x10   : > { %s490_s10 = smov (!%p142_p5, %s378_s10), 1  ;;  %s492_s9 = smov (!%p144_p6, %s374_s9), 1 }
  0x11   : > { %s298_s16 = sshll.u32 %s490_s10, 1  ;;  %155 = sbr.rel (%p152_p9) target bundleno = 24 (0x18), region = 28  ;;  %vm156_vm0 = vcmask (!%p152_p9), 27648   ;;  %vm158_vm1 = vcmask (!%p152_p9), 3072   ;;  %v392_v0 = vmov (!%p152_p9), 0.0  }
  0x12   : > { %s147_s17 = sadd.s32 %s298_s16, %s492_s9  ;;  %157 = vst.msk [vmem:[%s477_s1] sm:$0xf] (!%p152_p9), %vm156_vm0, %v392_v0 }
  0x13   : > { %s299_s18 = sshll.u32 %s147_s17, 2  ;;  %159 = vst.msk [vmem:[%s478_s2] sm:$0xf] (!%p152_p9), %vm158_vm1, %v392_v0 }
  0x14   : > { %s149_s21 = scalar_lea.vmem %s476_s0, %s299_s18 }
  0x18 PF: > { %v160_v1 = vld [vmem:[%s149_s21] sm:$0xf]  ;;  %vm236_vm2 = vcmask 1043456   ;;  %v393_v2 = vmov 0.0   ;;  %vm394_vm3 = vmmov 0   ;;  %vm241_vm4 = vcmask 3072  }
  0x19   : > { %304 = vmatprep.subr.mxu0 %v393_v2  ;;  %306 = vmatprep.mubr.msk.f32.mxu0 %vm394_vm3, %v393_v2  ;;  %v237_v3 = vsel %vm236_vm2, %v160_v1, 0.0  ;;  %v161_v7 = vld [vmem:[%s477_s1] sm:$0xf]  ;;  %vm233_vm5 = vcmask 27648  }
  0x1a   : > { %305 = vmatpush3.xpose.msra.mxu0 %v160_v1  ;;  %238 = vadd.xlane.f32.xlu0 %v237_v3  ;;  %v235_v4 = vld [vmem:[%s478_s2] sm:$0xf] }
  0x1d   : > { %307 = vmatmul.mubr.f32.vlgmr.msra.gmra.mrb[0].mxu0 %v160_v1 }
  0xa7   : > { %v239_v5 = vpop.xlane.xlu0 %238 }
  0xa8   : > { %v240_v6 = vadd.f32 %v239_v5, %v235_v4 }
  0xaa   : > { %242 = vst.msk [vmem:[%s478_s2] sm:$0xf] %vm241_vm4, %v240_v6 }
  0xf0   : > { %v228_v8 = vpop.f32.mrb[0].mxu0 }
  0xf1   : > { %v232_v9 = vadd.f32 %v228_v8, %v161_v7  ;;  %v308_v10 = vpop.f32.mrb[1].mxu0 }
  0xf3   : > { %234 = vst.msk [vmem:[%s477_s1] sm:$0xf] %vm233_vm5, %v232_v9 }
  0xf4 PF: > { %s13_s13 = sadd.s32 1, %s390_s13   ;;  %s479_s9 = smov %s382_s11 }
  0xf5   : > { %p10_p10 = scmp.ge.s32.totalorder %s13_s13, 6   ;;  %s480_s10 = smov %s386_s12 }
  0xf6   : > { %s481_s11 = smov %s484_s14  ;;  %s482_s12 = smov %s488_s15 }
  0xf7   :  { %12 = sbr.rel (!%p10_p10) target bundleno = 3 (0x3), region = 62 }

// kernel: downsampling_forward.3
= control target key start
LH: loop header
LB: loop body
LE: loop exit
PB: predicated region body
PF: predicated region fallthrough
CT: control target
= control target key end

     0   :  { %s502_s12 = smov 0   ;;  %s504_s13 = smov 0   ;;  %s559_s0 = inlined_call_operand.vmem [shape: f32[2,4,256], index: 0, kind: input, shape index: {}]   ;;  %s560_s1 = inlined_call_operand.vmem [shape: f32[8,4], index: 1, kind: input, shape index: {}]   ;;  %s561_s2 = inlined_call_operand.vmem [shape: f32[8,1], index: 2, kind: input, shape index: {}]   ;;  %s562_s3 = inlined_call_operand.vmem [shape: f32[2,8,256], index: 3, kind: output, shape index: {}]  }
   0x1   :  { %s506_s14 = smov 0   ;;  %s508_s15 = smov 0  }
   0x2   :  { %s510_s16 = smov 0  }
   0x3 LB: > { %s22_s17 = sadd.s32 1, %s469_s14  ;;  %s25_s18 = sadd.s32 1, %s473_s15  ;;  %s477_s16 = sphi %s510_s16, %s13_s16   ;;  %s473_s15 = sphi %s508_s15, %s566_s15   ;;  %s469_s14 = sphi %s506_s14, %s565_s14   ;;  %s465_s13 = sphi %s504_s13, %s564_s13   ;;  %s461_s12 = sphi %s502_s12, %s563_s12  }
   0x4   : > { %p23_p0 = scmp.ge.s32.totalorder %s22_s17, 2  ;;  %p379_p1 = scmp.ge.s32.totalorder %s477_s16, 1 }
   0x5   : > { %p156_p2 = scmp.lt.s32.totalorder %s477_s16, 5 }
   0x6   : > { %s568_s17 = smov (%p23_p0, %s22_s17), 0  ;;  %s570_s18 = smov (!%p23_p0, %s25_s18), %s473_s15 }
   0x7   : > { %p157_p3 = pnand %p379_p1, %p156_p2  ;;  %p27_p4 = scmp.ge.s32.totalorder %s570_s18, 2 }
   0x8   : > { %p186_p5 = scmp.lt.s32.totalorder (!%p157_p3), %s465_s13, 1  ;;  %p188_p6 = scmp.lt.s32.totalorder (!%p157_p3), %s461_s12, 1  ;;  %v479_v0 = vmov (!%p157_p3), 0.0   ;;  %vm480_vm0 = vmmov (!%p157_p3), 0   ;;  %v204_v1 = vld [vmem:[%s561_s2] sm:$0xff] (!%p157_p3)  ;;  %v481_v2 = vmov (!%p157_p3), 0  }
   0x9   : > { %s572_s18 = smov (%p27_p4, %s570_s18), 0  ;;  %160 = sbr.rel (%p157_p3) target bundleno = 238 (0xee), region = 32 }
   0xa   : > { %390 = vmatprep.subr.mxu0 (!%p157_p3), %v479_v0  ;;  %392 = vmatprep.mubr.msk.f32.mxu0 (!%p157_p3), %vm480_vm0, %v479_v0  ;;  %vm214_vm1 = vcmask (!%p157_p3), 1043456   ;;  %v203_v3 = vld [vmem:[%s560_s1] sm:$0xff] (!%p157_p3)  ;;  %vm210_vm2 = vcmask (!%p157_p3), 31744  }
   0xb   : > { %438 = vset.pattern.permute.xlu0 (!%p157_p3), %v481_v2 }
   0xc   : > { %207 = vperm.xlu0 (!%p157_p3), %438, %v204_v1  }
  0x10   : > { %s574_s13 = smov (!%p186_p5, %s465_s13), 1  ;;  %s576_s12 = smov (!%p188_p6, %s461_s12), 1 }
  0x11   : > { %s380_s21 = sshll.u32 %s574_s13, 1 }
  0x12   : > { %s191_s22 = sadd.s32 %s380_s21, %s576_s12 }
  0x13   : > { %s381_s23 = sshll.u32 %s191_s22, 2  ;;  %s383_s29 = sshll.u32 %s191_s22, 3 }
  0x14   : > { %s193_s26 = scalar_lea.vmem %s559_s0, %s381_s23  ;;  %s201_s5 = scalar_lea.vmem %s562_s3, %s383_s29 }
  0x15   : > { %v202_v4 = vld [vmem:[%s193_s26] sm:$0xf] }
  0x16   : > { %391 = vmatpush3.msk.msra.mxu0 %vm214_vm1, %v202_v4 }
  0x17   : > { %393 = vmatmul.mubr.msk.f32.vlgmr.msra.gmra.mrb[0].mxu0 %vm210_vm2, %v203_v3 }
  0x8b   : > { %v208_v5 = vpop.permute.xlu0 %207 }
  0xea   : > { %v284_v6 = vpop.f32.mrb[0].mxu0 }
  0xeb   : > { %v285_v7 = vadd.f32 %v284_v6, %v208_v5  ;;  %v394_v8 = vpop.f32.mrb[1].mxu0 }
  0xed   : > { %288 = vst [vmem:[%s201_s5] sm:$0xff] %v285_v7 }
  0xee PF: > { %s13_s16 = sadd.s32 1, %s477_s16   ;;  %s563_s12 = smov %s469_s14 }
  0xef   : > { %p10_p7 = scmp.ge.s32.totalorder %s13_s16, 6   ;;  %s564_s13 = smov %s473_s15 }
  0xf0   : > { %s565_s14 = smov %s568_s17  ;;  %s566_s15 = smov %s572_s18 }
  0xf1   :  { %12 = sbr.rel (!%p10_p7) target bundleno = 3 (0x3), region = 62 }

</bundles_post_ra>
